<compile_context>
chip_gen: v6e
topology: v6e:2x2x1
jax: 0.10.0
libtpu: 0.0.40
codegen_flags: <defaults>
</compile_context>

<pallas_src>
import functools

import jax
import jax.numpy as jnp
from jax.experimental import pallas as pl
from jax.experimental.pallas import tpu as pltpu

_LANE = 128


def _yolo_conv_kernel(x_ref, w_ref, b_ref, o_ref, *, activation):
    # x_ref: (C_in, t_hw)   w_ref: (t_co, C_in)   b_ref: (t_co, 1)
    # o_ref: (t_co, t_hw)
    acc = jnp.dot(w_ref[...], x_ref[...], preferred_element_type=jnp.float32)
    acc = acc + b_ref[...]                 # broadcast bias over the H*W columns
    o_ref[...] = activation(acc).astype(o_ref.dtype)


def _vmem_budget_bytes():
    """Generation-aware usable-VMEM budget (also passed as vmem_limit_bytes)."""
    try:
        physical = int(pltpu.get_tpu_info().vmem_capacity_bytes)
    except Exception:
        physical = 64 * 1024 * 1024        # conservative: v7x per-TC VMEM
    # ~65% of physical: 128 MiB (v5e/v6e) -> ~83 MiB, 64 MiB (v7x) -> ~41 MiB.
    return int(physical * 0.65)


def _pick_co_tile(c_out):
    if c_out <= 256:
        return c_out                       # full extent: always legal
    if c_out % 256 == 0:
        return 256                         # MXU M width on v6e/v7x (2x128 on v5e)
    if c_out % 128 == 0:
        return 128
    return c_out                           # odd large C_out: keep full extent


def _pick_hw_tile(hw, c_in, t_co, itemsize, vmem_budget_bytes):
    """Largest H*W tile whose per-step VMEM footprint fits the budget."""
    # Resident bytes: weight tile (double-buffered by the default pipeline,
    # even though its index_map is constant) + f32 bias.
    resident = 2 * t_co * c_in * itemsize + 2 * t_co * 4
    # Streaming bytes per output column: double-buffered x and out tiles plus
    # the f32 accumulator / activation intermediate before the output cast.
    per_col = 2 * c_in * itemsize + 2 * t_co * itemsize + 4 * t_co
    t = max(0, vmem_budget_bytes - resident) // max(1, per_col)
    if hw <= t:
        return hw                          # one H*W step per (batch, co) block
    if t >= 512:
        return (t // 512) * 512            # MXU-N friendly, >=2 KiB DMA rows
    return max(_LANE, (t // _LANE) * _LANE)


def yolo_conv_1x1(x_nchw, weight, bias, activation=lambda v: v, *,
                  t_hw=None, t_co=None):
    """1x1 Conv2d (stride=1, pad=0, bias=True) + activation, NCHW in/out.

    weight: (C_out, C_in, 1, 1) like nn.Conv2d.weight;  bias: (C_out,)
    """
    n, c_in, h, w = x_nchw.shape
    c_out = weight.shape[0]
    hw = h * w
    itemsize = jnp.dtype(x_nchw.dtype).itemsize

    budget = _vmem_budget_bytes()
    if t_co is None:
        t_co = _pick_co_tile(c_out)
    if t_hw is None:
        t_hw = _pick_hw_tile(hw, c_in, t_co, itemsize, budget)

    # Free reshape: NCHW is already contiguous as (N, C_in, H*W).
    x_flat = x_nchw.reshape(n, c_in, hw)

    # NOTE: weights are deliberately cast to the activation dtype (bf16 inputs
    # take the bf16 MXU path); accumulation stays f32 via preferred_element_type.
    w_mat = weight.reshape(c_out, c_in).astype(x_nchw.dtype)   # (C_out, C_in)
    b_mat = bias.reshape(c_out, 1).astype(jnp.float32)         # (C_out, 1)

    kernel = functools.partial(_yolo_conv_kernel, activation=activation)
    grid = (n, pl.cdiv(c_out, t_co), pl.cdiv(hw, t_hw))

    cost = pl.CostEstimate(
        flops=2 * n * hw * c_in * c_out,
        transcendentals=0,
        bytes_accessed=itemsize * (n * hw * (c_in + c_out) + c_in * c_out)
                       + 4 * c_out,
    )

    out_flat = pl.pallas_call(
        kernel,
        out_shape=jax.ShapeDtypeStruct((n, c_out, hw), x_nchw.dtype),
        grid_spec=pltpu.PrefetchScalarGridSpec(
            num_scalar_prefetch=0,
            grid=grid,
            in_specs=[
                # (None, ...) squeezes the batch dim out of the kernel Ref.
                pl.BlockSpec((None, c_in, t_hw), lambda b, co, j: (b, 0, j)),
                # Constant-in-j index maps: weight/bias stay VMEM-resident
                # across the whole inner H*W loop.
                # TODO(synk): pipeline_mode=pl.Buffered(1) would halve the
                # resident weight footprint; skipped for lowering portability.
                pl.BlockSpec((t_co, c_in), lambda b, co, j: (co, 0)),
                pl.BlockSpec((t_co, 1), lambda b, co, j: (co, 0)),
            ],
            out_specs=pl.BlockSpec((None, t_co, t_hw),
                                   lambda b, co, j: (b, co, j)),
        ),
        compiler_params=pltpu.CompilerParams(
            dimension_semantics=("parallel", "parallel", "parallel"),
            vmem_limit_bytes=int(budget),
        ),
        cost_estimate=cost,
    )(x_flat, w_mat, b_mat)

    return out_flat.reshape(n, c_out, h, w)   # free reshape back to NCHW


def _reference(x_nchw, weight, bias, activation=lambda v: v):
    # Plain-JAX reference of a 1x1 conv for correctness check.
    w_mat = weight.reshape(weight.shape[0], weight.shape[1])      # (C_out, C_in)
    out = jnp.einsum("nchw,oc->nohw", x_nchw, w_mat) + bias[None, :, None, None]
    return activation(out)


if __name__ == "__main__":
    key = jax.random.PRNGKey(0)
    k_x, k_w, k_b, k_x2, k_w2, k_b2 = jax.random.split(key, 6)

    # --- Case 1: module defaults (identity activation), auto tile sizes.
    batch, c_in, c_out, spatial = 2, 4, 8, 16
    x = jax.random.normal(k_x, (batch, c_in, spatial, spatial), jnp.float32)
    weight = jax.random.normal(k_w, (c_out, c_in, 1, 1), jnp.float32) * 0.1
    bias = jax.random.normal(k_b, (c_out,), jnp.float32) * 0.1
    ident = lambda v: v

    out = jax.block_until_ready(yolo_conv_1x1(x, weight, bias, activation=ident))
    ref = _reference(x, weight, bias, activation=ident)
    assert out.shape == (batch, c_out, spatial, spatial)
    assert jnp.allclose(out, ref, atol=1e-5, rtol=1e-5)

    # --- Case 2: exercises hw % t_hw != 0 (partial last H*W block), the
    # C_out grid axis, and a fused LeakyReLU-style activaction_func.
    batch2, c_in2, c_out2, spatial2 = 2, 4, 16, 20        # hw = 400
    x2 = jax.random.normal(k_x2, (batch2, c_in2, spatial2, spatial2), jnp.float32)
    weight2 = jax.random.normal(k_w2, (c_out2, c_in2, 1, 1), jnp.float32) * 0.1
    bias2 = jax.random.normal(k_b2, (c_out2,), jnp.float32) * 0.1
    leaky = lambda v: jnp.where(v > 0, v, 0.1 * v)

    out2 = jax.block_until_ready(
        yolo_conv_1x1(x2, weight2, bias2, activation=leaky, t_hw=256, t_co=8))
    ref2 = _reference(x2, weight2, bias2, activation=leaky)
    assert out2.shape == (batch2, c_out2, spatial2, spatial2)
    assert jnp.allclose(out2, ref2, atol=1e-5, rtol=1e-5)

    print("KERNEL_OK")
</pallas_src>

<mosaic_0001>
module attributes {stable_mosaic.version = 11 : i64} {
  func.func @_yolo_conv_kernel(%arg0: i32, %arg1: i32, %arg2: i32, %arg3: memref<1x4x256xf32, #tpu.memory_space<vmem>>, %arg4: memref<8x4xf32, #tpu.memory_space<vmem>>, %arg5: memref<8x1xf32, #tpu.memory_space<vmem>>, %arg6: memref<1x8x256xf32, #tpu.memory_space<vmem>>) attributes {dimension_semantics = [#tpu.dimension_semantics<parallel>, #tpu.dimension_semantics<parallel>, #tpu.dimension_semantics<parallel>], iteration_bounds = array<i64: 2, 1, 1>, scalar_prefetch = 0 : i64, scratch_operands = 0 : i64, tpu.core_type = #tpu.core_type<tc>, window_params = [{transform_indices = @transform_0, window_bounds = array<i64: 1, 4, 256>}, {transform_indices = @transform_1, window_bounds = array<i64: 8, 4>}, {transform_indices = @transform_2, window_bounds = array<i64: 8, 1>}, {transform_indices = @transform_3, window_bounds = array<i64: 1, 8, 256>}]} {
    %c0 = arith.constant 0 : index
    %c0_0 = arith.constant 0 : index
    %0 = vector.load %arg4[%c0, %c0_0] : memref<8x4xf32, #tpu.memory_space<vmem>>, vector<8x4xf32>
    %c0_1 = arith.constant 0 : index
    %c0_2 = arith.constant 0 : index
    %c0_3 = arith.constant 0 : index
    %1 = vector.load %arg3[%c0_1, %c0_2, %c0_3] : memref<1x4x256xf32, #tpu.memory_space<vmem>>, vector<1x4x256xf32>
    %2 = vector.shape_cast %1 : vector<1x4x256xf32> to vector<4x256xf32>
    %cst = arith.constant dense<0.000000e+00> : vector<8x256xf32>
    %3 = tpu.matmul %0, %2, %cst {dimension_numbers = #tpu.dot_dimension_numbers<[1], [0], [0], [1], [0, 0, 1, 1], [], []>} : vector<8x4xf32>, vector<4x256xf32>, vector<8x256xf32> -> vector<8x256xf32>
    %c0_4 = arith.constant 0 : index
    %c0_5 = arith.constant 0 : index
    %4 = vector.load %arg5[%c0_4, %c0_5] : memref<8x1xf32, #tpu.memory_space<vmem>>, vector<8x1xf32>
    %5 = vector.broadcast %4 : vector<8x1xf32> to vector<8x256xf32>
    %6 = arith.addf %3, %5 : vector<8x256xf32>
    %c0_6 = arith.constant 0 : index
    %c0_7 = arith.constant 0 : index
    %c0_8 = arith.constant 0 : index
    %7 = vector.load %arg6[%c0_6, %c0_7, %c0_8] : memref<1x8x256xf32, #tpu.memory_space<vmem>>, vector<1x8x256xf32>
    %8 = vector.shape_cast %7 : vector<1x8x256xf32> to vector<8x256xf32>
    %9 = vector.shape_cast %6 : vector<8x256xf32> to vector<1x8x256xf32>
    tpu.vector_store %arg6[%c0_6, %c0_7, %c0_8], %9 {strides = array<i32>} : memref<1x8x256xf32, #tpu.memory_space<vmem>>, vector<1x8x256xf32>,
    return
  }
  func.func @transform_0(%arg0: i32, %arg1: i32, %arg2: i32) -> (i32, i32, i32) {
    %c0_i32 = arith.constant 0 : i32
    %c0_i32_0 = arith.constant 0 : i32
    return %arg0, %c0_i32, %arg2 : i32, i32, i32
  }
  func.func @transform_1(%arg0: i32, %arg1: i32, %arg2: i32) -> (i32, i32) {
    %c0_i32 = arith.constant 0 : i32
    %c0_i32_0 = arith.constant 0 : i32
    return %arg1, %c0_i32 : i32, i32
  }
  func.func @transform_2(%arg0: i32, %arg1: i32, %arg2: i32) -> (i32, i32) {
    %c0_i32 = arith.constant 0 : i32
    %c0_i32_0 = arith.constant 0 : i32
    return %arg1, %c0_i32 : i32, i32
  }
  func.func @transform_3(%arg0: i32, %arg1: i32, %arg2: i32) -> (i32, i32, i32) {
    %c0_i32 = arith.constant 0 : i32
    return %arg0, %arg1, %arg2 : i32, i32, i32
  }
}

</mosaic_0001>

<bundles_post_ra>
// kernel: tpu_custom_call.1
= control target key start
LH: loop header
LB: loop body
LE: loop exit
PB: predicated region body
PF: predicated region fallthrough
CT: control target
= control target key end

     0   :  { %8 = vsyncpa [#allocation3], 0  ;;  %s750_s0 = inlined_call_operand.vmem [shape: f32[2,4,256], index: 0, kind: input, shape index: {}]   ;;  %s751_s1 = inlined_call_operand.vmem [shape: f32[8,4], index: 1, kind: input, shape index: {}]   ;;  %s752_s2 = inlined_call_operand.vmem [shape: f32[8,1], index: 2, kind: input, shape index: {}]   ;;  %s753_s3 = inlined_call_operand.hbm [shape: f32[2,8,256], index: 3, kind: output, shape index: {}]  }
   0x1   :  { %10 = vsyncpa [#allocation3 + $0x1], 0  ;;  %s645_s12 = smov 0   ;;  %s647_s13 = smov 0  }
   0x2   :  { %s649_s14 = smov 0   ;;  %s651_s15 = smov 0  }
   0x3   :  { %s653_s16 = smov 0   ;;  %s655_s17 = smov 0  }
   0x4 LB: > { %s465_s18 = sadd.s32 4294967295, %s620_s17   ;;  %s466_s19 = sadd.s32 4294967294, %s620_s17   ;;  %s620_s17 = sphi %s655_s17, %s16_s17   ;;  %s616_s16 = sphi %s653_s16, %s760_s16   ;;  %s612_s15 = sphi %s651_s15, %s759_s15   ;;  %s608_s14 = sphi %s649_s14, %s758_s14   ;;  %s604_s13 = sphi %s647_s13, %s757_s13   ;;  %s600_s12 = sphi %s645_s12, %s756_s12  }
   0x5   : > { %s35_s20 = sadd.s32 1, %s616_s16  ;;  %s126_s21 = sadd.s32 1, %s608_s14 }
   0x6   : > { %p37_p0 = scmp.ge.s32.totalorder %s35_s20, 2  ;;  %p136_p1 = scmp.ne.s32.totalorder %s608_s14, %s604_s13 }
   0x7   : > { %p137_p2 = scmp.eq.s32.totalorder %s465_s18, 1  ;;  %p142_p3 = scmp.ne.s32.totalorder %s604_s13, %s600_s12 }
   0x8   : > { %s762_s20 = smov (%p37_p0, %s35_s20), 0  ;;  %p143_p5 = scmp.eq.s32.totalorder %s466_s19, 1 }
   0x9   : > { %p685_p4 = por %p137_p2, %p136_p1  ;;  %s119_s23 = ssub.s32 %s616_s16, %s762_s20 }
   0xa   : > { %p471_p6 = scmp.ge.s32.totalorder %s620_s17, 1  ;;  %p124_p7 = scmp.eq.s32.totalorder %s119_s23, 0 }
   0xb   : > { %p692_p8 = por %p143_p5, %p142_p3  ;;  %p188_p9 = scmp.lt.s32.totalorder %s620_s17, 3 }
   0xc   : > { %s698_s25 = scalar_select %p124_p7, %s608_s14, %s126_s21  }
   0xd   : > { %p189_p10 = pnand %p471_p6, %p188_p9 }
   0xe   : > { %p225_p11 = scmp.lt.s32.totalorder (!%p189_p10), %s612_s15, 1  ;;  %s221_s8 = sand.u32 (!%p189_p10), 1, %s604_s13  }
   0xf   : > { %192 = sbr.rel (%p189_p10) target bundleno = 239 (0xef), region = 32  ;;  %s472_s9 = sshll.u32 (!%p189_p10), %s221_s8, 4 }
  0x10   : > { %s484_s10 = sshll.u32 (!%p189_p10), %s612_s15, 8  ;;  %s223_s11 = scalar_lea.vmem (!%p189_p10), [#allocation2], %s472_s9 }
  0x11   : > { %s354_s18 = sshll.u32 (!%p189_p10), %s223_s11, 4  ;;  %s352_s23 = scalar_lea.hbm (!%p189_p10), %s753_s3, %s484_s10  ;;  %s355_s18 = int_to_ptr.vmem [resolvable:$true] %s354_s18 }
  0x12   : > { %s336_s26 = scalar_lea.sflag (!%p189_p10), [#allocation3], %s221_s8  ;;  %s544_s27 = scalar_lea.vmem (!%p189_p10), %s355_s18, 256 }
  0x13   : > { %p545_p12 = scmp.ne.s32.totalorder (!%p189_p10), %s355_s18, %s544_s27 }
  0x14   : > { %v622_v0 = vmov 0.0   ;;  %v623_v1 = vmov 0   ;;  %v245_v2 = vld [vmem:[%s752_s2] sm:$0xff]  ;;  %s226_s28 = scalar_select %p225_p11, %s612_s15, 1  ;;  %vm257_vm0 = vcmask 1043456   ;;  %vm253_vm1 = vcmask 31744  }
  0x15   : > { %326 = vmatprep.mubr.f32.mxu0 %v622_v0  ;;  %542 = vset.pattern.permute.xlu0 %v623_v1  ;;  %v243_v5 = vld [vmem:[%s751_s1] sm:$0xff]  ;;  %p546_p13 = pnand %p545_p12, %p685_p4 }
  0x16   : > { %248 = vperm.xlu0 %542, %v245_v2   ;;  %s483_s29 = sshll.u32 %s226_s28, 3  ;;  %s624_s28 = smov [#allocation2]  }
  0x17   : > { %s232_s5 = scalar_lea.vmem %s750_s0, %s483_s29  ;;  %p547_p0 = pneg %p546_p13 }
  0x18   : > { %v244_v3 = vld [vmem:[%s232_s5] sm:$0xff]  ;;  %s548_s15 = sshll.u32 %s624_s28, 4  ;;  %s549_s15 = int_to_ptr.vmem [resolvable:$false] %s548_s15 }
  0x19   : > { %v252_v4 = vcombine.high %v244_v3, %v244_v3  ;;  %s550_s29 = scalar_lea.vmem %s549_s15, 512  ;;  %p551_p1 = scmp.lt.s32.totalorder %s355_s18, %s549_s15 }
  0x1a   : > { %p552_p2 = scmp.lt.s32.totalorder %s550_s29, %s544_s27 }
  0x1b   : > { %475 = vmatprep.subr.msk.mxu0 %vm257_vm0, %v252_v4 }
  0x1c   : > { %476 = vmatpush1.msk.msra.mxu0 %vm257_vm0, %v244_v3  ;;  %p553_p3 = por %p552_p2, %p551_p1 }
  0x1d   : > { %477 = vmatmul.mubr.msk.f32.vlgmr.msra.gmra.mxu0 %vm253_vm1, %v243_v5 }
  0x1e   : > { %p554_p5 = pnand %p553_p3, %p547_p0 }
  0x91   : > { %v249_v6 = vpop.permute.xlu0 %248 }
  0xdd   : > { %v328_v7 = vpop.f32.mrf.mxu0 }
  0xde   : > { %v329_v8 = vadd.f32 %v328_v7, %v249_v6 }
  0xdf   : > { %v330_v9 = vpop.f32.mrf.mxu0 }
  0xe0   : > { %333 = vst [vmem:[%s223_s11] sm:$0xff] %v329_v8  ;;  %v331_v10 = vadd.f32 %v330_v9, %v249_v6 }
  0xe2   : > { %334 = vst [vmem:[%s223_s11 + $0x8] sm:$0xff] %v331_v10 }
  0xe3   : > { %557 = shalt.err (!%p554_p5)
}
  0xe4   : > { %s558_s30 = scalar_lea.hbm %s352_s23, 256  ;;  %s562_s6 = scalar_lea.hbm %s753_s3, 512 }
  0xe5   : > { %p559_p6 = scmp.ne.s32.totalorder %s352_s23, %s558_s30  ;;  %p563_p10 = scmp.lt.s32.totalorder %s352_s23, %s753_s3 }
  0xe6   : > { %p564_p11 = scmp.lt.s32.totalorder %s562_s6, %s558_s30 }
  0xe7   : > { %p560_p7 = pnand %p559_p6, %p685_p4 }
  0xe8   : > { %p565_p12 = por %p564_p11, %p563_p10 }
  0xe9   : > { %p561_p9 = pneg %p560_p7 }
  0xeb   : > { %p566_p13 = pnand %p565_p12, %p561_p9 }
  0xed   : > { %569 = shalt.err (!%p566_p13)
}
  0xee   : > { %485 = dma.vmem_to_hbm [thread:$0]  (%p685_p4), %s355_s18, 256, %s352_s23, %s336_s26  }
  0xef PF: > { %p491_p0 = scmp.ge.s32.totalorder %s620_s17, 2  ;;  %s366_s9 = sand.u32 1, %s600_s12  }
  0xf0   : > { %s367_s10 = scalar_lea.sflag [#allocation3], %s366_s9 }
  0xf1   : > { %p488_p1 = pnand %p491_p0, %p692_p8 }
  0xf3   : > { %p489_p2 = pneg %p488_p1 }
  0xf5   : > { %595 = dma.done.wait (%p489_p2), %s367_s10, 256  }
  0xf6   : > { %597 = vsyncadd (%p489_p2), %s367_s10, 4294967040  ;;  %s16_s17 = sadd.s32 1, %s620_s17   ;;  %s756_s12 = smov %s604_s13 }
  0xf7   : > { %p13_p3 = scmp.ge.s32.totalorder %s16_s17, 4   ;;  %s757_s13 = smov %s608_s14 }
  0xf8   : > { %s758_s14 = smov %s698_s25  ;;  %s759_s15 = smov %s616_s16 }
  0xf9   : > { %s760_s16 = smov %s762_s20  ;;  %15 = sbr.rel (!%p13_p3) target bundleno = 4 (0x4), region = 73 }
  0xfe   :  { %372 = vsyncpa [#allocation3], 1 }
  0xff   :  { %374 = vsyncpa [#allocation3 + $0x1], 1 }

</bundles_post_ra>
